<compile_context>
chip_gen: v6e
topology: v6e:2x2x1
jax: 0.10.0
libtpu: 0.0.40
codegen_flags: <defaults>
</compile_context>

<pallas_src>
import functools

import jax
import jax.numpy as jnp
from jax.experimental import pallas as pl
from jax.experimental.pallas import tpu as pltpu

SUBLANE = 8
LANE = 128


def _round_up(x, m):
    return ((x + m - 1) // m) * m


def _vmem_cap_bytes():
    """~85% of this generation's physical VMEM (conservative 64 MiB fallback)."""
    cap = 64 * 1024 * 1024
    try:
        info = pltpu.get_tpu_info()
        for attr in ("vmem_capacity_bytes", "vmem_size_bytes"):
            v = getattr(info, attr, None)
            if v:
                cap = int(v)
                break
    except Exception:
        pass
    return int(0.85 * cap)


def _phys_bytes(rows, cols, itemsize):
    """Physical VMEM footprint of a (rows, cols) array under (8..16,128) tiling."""
    return _round_up(max(int(rows), 1), 16) * _round_up(max(int(cols), 1), LANE) * itemsize


def _choose_batch_tile(batch, tile_b):
    """Sublane-aligned batch tile; keep >=2 tiles when possible (v7x megacore)."""
    if batch <= SUBLANE:
        return batch                                  # full-dim block, always legal
    tb = min(int(tile_b), batch)
    if batch >= 2 * SUBLANE:
        tb = min(tb, _round_up((batch + 1) // 2, SUBLANE))   # at least 2 tiles
    return max(SUBLANE, (tb // SUBLANE) * SUBLANE)


def _resident_spec(shape):
    """Constant-index BlockSpec for a VMEM-resident operand, single-buffered."""
    index_map = lambda i: (0, 0)
    try:
        return pl.BlockSpec(shape, index_map, pipeline_mode=pl.Buffered(1))
    except Exception:  # pipeline_mode / Buffered(1) unsupported -> default buffering
        return pl.BlockSpec(shape, index_map)


# --------------------------------------------------------------------------- #
# Kernels
# --------------------------------------------------------------------------- #
def _resident_kernel(x_ref, w1_ref, b1_ref, w2_ref, b2_ref, o_ref, *, compute_dtype):
    x = x_ref[...].astype(compute_dtype)
    h = jnp.dot(x, w1_ref[...], preferred_element_type=jnp.float32)
    h = jnp.maximum(h + b1_ref[...], 0.0)                     # f32 epilogue (VPU)
    y = jnp.dot(h.astype(compute_dtype), w2_ref[...],
                preferred_element_type=jnp.float32)
    o_ref[...] = jnp.maximum(y + b2_ref[...], 0.0).astype(o_ref.dtype)


def _hidden_tiled_kernel(x_ref, w1_ref, b1_ref, w2_ref, b2_ref, o_ref, acc_ref,
                         *, compute_dtype):
    k = pl.program_id(1)

    @pl.when(k == 0)
    def _():
        acc_ref[...] = jnp.zeros_like(acc_ref)

    x = x_ref[...].astype(compute_dtype)
    h = jnp.dot(x, w1_ref[...], preferred_element_type=jnp.float32)
    h = jnp.maximum(h + b1_ref[...], 0.0)                     # ReLU is per-hidden-unit
    acc_ref[...] += jnp.dot(h.astype(compute_dtype), w2_ref[...],
                            preferred_element_type=jnp.float32)

    @pl.when(k == pl.num_programs(1) - 1)
    def _():
        o_ref[...] = jnp.maximum(acc_ref[...] + b2_ref[...], 0.0).astype(o_ref.dtype)


# --------------------------------------------------------------------------- #
# Parameter preparation (ONCE per model, not per call)
# --------------------------------------------------------------------------- #
def prepare_params(w1, b1, w2, b2, *, compute_dtype=jnp.bfloat16, hidden_tile=None):
    """Cast weights to the MXU compute dtype and pick the execution path.

    w1: [input_dim, hidden_dim]   b1: [hidden_dim] or [1, hidden_dim]
    w2: [hidden_dim, input_dim]   b2: [input_dim]  or [1, input_dim]
    hidden_tile: force the hidden-dim-tiled path with this tile (multiple of 128).
    """
    input_dim, hidden_dim = w1.shape
    b1 = jnp.asarray(b1).reshape(1, hidden_dim).astype(jnp.float32)
    b2 = jnp.asarray(b2).reshape(1, input_dim).astype(jnp.float32)

    cbytes = jnp.dtype(compute_dtype).itemsize
    weight_bytes = 2 * input_dim * hidden_dim * cbytes
    vmem_cap = _vmem_cap_bytes()

    use_tiled = hidden_tile is not None or weight_bytes > vmem_cap // 2
    th = None
    if use_tiled:
        th = int(hidden_tile) if hidden_tile is not None else 512
        th = max(LANE, _round_up(th, LANE))
        th = min(th, _round_up(hidden_dim, LANE))
        h_pad = _round_up(hidden_dim, th)
        if h_pad != hidden_dim:
            # One-time zero padding; zeros are inert through matmul+bias+ReLU.
            w1 = jnp.zeros((input_dim, h_pad), w1.dtype).at[:, :hidden_dim].set(w1)
            w2 = jnp.zeros((h_pad, input_dim), w2.dtype).at[:hidden_dim, :].set(w2)
            b1 = jnp.zeros((1, h_pad), jnp.float32).at[:, :hidden_dim].set(b1)

    return dict(
        w1=w1.astype(compute_dtype), b1=b1,
        w2=w2.astype(compute_dtype), b2=b2,
        input_dim=int(input_dim), hidden_dim=int(hidden_dim),
        compute_dtype=compute_dtype, hidden_tile=th,
    )


# --------------------------------------------------------------------------- #
# Forward pass
# --------------------------------------------------------------------------- #
def diffusion_denoiser(x, params, *, tile_b=1024, out_dtype=None):
    """y = relu(relu(x @ W1 + b1) @ W2 + b2).

    x: [B, input_dim]; returns [B, input_dim] in out_dtype (default: x.dtype;
    pass bf16 if the consumer accepts it to halve output write traffic).
    """
    B, input_dim = x.shape
    assert input_dim == params["input_dim"]
    w1, b1, w2, b2 = params["w1"], params["b1"], params["w2"], params["b2"]
    compute_dtype = params["compute_dtype"]
    th = params["hidden_tile"]
    h_dim = w1.shape[1]                               # hidden (possibly padded)
    out_dtype = x.dtype if out_dtype is None else out_dtype

    xbytes = jnp.dtype(x.dtype).itemsize
    obytes = jnp.dtype(out_dtype).itemsize
    cbytes = jnp.dtype(compute_dtype).itemsize
    vmem_cap = _vmem_cap_bytes()

    tb = _choose_batch_tile(B, tile_b)

    def vmem_est(tb_):
        wcols = th if th is not None else h_dim
        # Count 2x weight buffers (worst case if single-buffering is unavailable).
        weights = 2 * (_phys_bytes(input_dim, wcols, cbytes)
                       + _phys_bytes(wcols, input_dim, cbytes))
        biases = 2 * (_phys_bytes(1, wcols, 4) + _phys_bytes(1, input_dim, 4))
        act = (2 * _phys_bytes(tb_, input_dim, xbytes)     # double-buffered x tile
               + 2 * _phys_bytes(tb_, input_dim, obytes)   # double-buffered out tile
               + _phys_bytes(tb_, wcols, 4)                # f32 hidden activation
               + 2 * _phys_bytes(tb_, input_dim, 4))       # f32 acc / pre-store value
        return weights + biases + act

    while tb > SUBLANE and int(1.5 * vmem_est(tb)) > vmem_cap:
        tb = max(SUBLANE, (tb // 2 // SUBLANE) * SUBLANE)
    vmem_limit = int(min(max(int(1.5 * vmem_est(tb)), 8 * 1024 * 1024), vmem_cap))

    n_b = pl.cdiv(B, tb)
    cost = pl.CostEstimate(
        flops=4 * B * input_dim * h_dim,
        transcendentals=0,
        bytes_accessed=(B * input_dim * (xbytes + obytes)
                        + 2 * input_dim * h_dim * cbytes
                        + 4 * (h_dim + input_dim)),
    )

    if th is None:
        # Resident-weight fast path: single batch grid axis, weights stay in VMEM.
        grid = (n_b,)
        kernel = functools.partial(_resident_kernel, compute_dtype=compute_dtype)
        in_specs = [
            pl.BlockSpec((tb, input_dim), lambda i: (i, 0)),   # x tile (pipelined)
            _resident_spec((input_dim, h_dim)),                # W1 (resident)
            _resident_spec((1, h_dim)),                        # b1 (resident)
            _resident_spec((h_dim, input_dim)),                # W2 (resident)
            _resident_spec((1, input_dim)),                    # b2 (resident)
        ]
        out_specs = pl.BlockSpec((tb, input_dim), lambda i: (i, 0))
        scratch_shapes = []
        dim_sem = ("parallel",)
    else:
        # Hidden-tiled fallback: batch "parallel" x hidden "arbitrary" reduction.
        grid = (n_b, h_dim // th)
        kernel = functools.partial(_hidden_tiled_kernel, compute_dtype=compute_dtype)
        in_specs = [
            pl.BlockSpec((tb, input_dim), lambda i, k: (i, 0)),   # x (revisited)
            pl.BlockSpec((input_dim, th), lambda i, k: (0, k)),   # W1 hidden slab
            pl.BlockSpec((1, th), lambda i, k: (0, k)),           # b1 hidden slab
            pl.BlockSpec((th, input_dim), lambda i, k: (k, 0)),   # W2 hidden slab
            pl.BlockSpec((1, input_dim), lambda i, k: (0, 0)),    # b2
        ]
        out_specs = pl.BlockSpec((tb, input_dim), lambda i, k: (i, 0))
        scratch_shapes = [pltpu.VMEM((tb, input_dim), jnp.float32)]
        dim_sem = ("parallel", "arbitrary")

    return pl.pallas_call(
        kernel,
        out_shape=jax.ShapeDtypeStruct((B, input_dim), out_dtype),
        grid_spec=pltpu.PrefetchScalarGridSpec(
            num_scalar_prefetch=0,
            grid=grid,
            in_specs=in_specs,
            out_specs=out_specs,
            scratch_shapes=scratch_shapes,
        ),
        compiler_params=pltpu.CompilerParams(
            dimension_semantics=dim_sem,
            vmem_limit_bytes=vmem_limit,
        ),
        cost_estimate=cost,
    )(x, w1, b1, w2, b2)


def init_params(key, input_dim, hidden_dim, dtype=jnp.float32):
    """Deterministic init mimicking nn.Linear's U(-1/sqrt(fan_in), 1/sqrt(fan_in))."""
    k1, k2, k3, k4 = jax.random.split(key, 4)
    lim1 = 1.0 / jnp.sqrt(input_dim)
    lim2 = 1.0 / jnp.sqrt(hidden_dim)
    w1 = jax.random.uniform(k1, (input_dim, hidden_dim), dtype, -lim1, lim1)
    b1 = jax.random.uniform(k2, (1, hidden_dim), dtype, -lim1, lim1)
    w2 = jax.random.uniform(k3, (hidden_dim, input_dim), dtype, -lim2, lim2)
    b2 = jax.random.uniform(k4, (1, input_dim), dtype, -lim2, lim2)
    return w1, b1, w2, b2


if __name__ == "__main__":
    key = jax.random.PRNGKey(0)
    k1, k2, k3, k4 = jax.random.split(key, 4)

    # ---- Test 1: resident-weight path --------------------------------------
    input_dim, hidden_dim, batch = 16, 32, 512
    x = jax.random.normal(k1, (batch, input_dim), jnp.float32)
    w1, b1, w2, b2 = init_params(k2, input_dim, hidden_dim)
    ref = jnp.maximum(jnp.maximum(x @ w1 + b1, 0.0) @ w2 + b2, 0.0)

    # f32 MXU operands: tight check against the pure-JAX reference.
    p_f32 = prepare_params(w1, b1, w2, b2, compute_dtype=jnp.float32)
    out_f32 = jax.block_until_ready(diffusion_denoiser(x, p_f32))
    assert out_f32.shape == (batch, input_dim) and out_f32.dtype == x.dtype
    assert jnp.allclose(out_f32, ref, atol=1e-5, rtol=1e-5)

    # Default bf16 MXU operands + bf16 output; uneven batch (200 rows, tile 104)
    # exercises partial-block masking of the unpadded design.
    p_bf16 = prepare_params(w1, b1, w2, b2)           # compute_dtype=bfloat16
    out_bf16 = jax.block_until_ready(
        diffusion_denoiser(x[:200], p_bf16, out_dtype=jnp.bfloat16))
    assert out_bf16.shape == (200, input_dim) and out_bf16.dtype == jnp.bfloat16
    assert jnp.allclose(out_bf16.astype(jnp.float32), ref[:200], atol=1e-1, rtol=1e-1)

    # ---- Test 2: hidden-tiled fallback path (forced, exercises hidden padding)
    input_dim2, hidden_dim2, batch2 = 16, 192, 128
    x2 = jax.random.normal(k3, (batch2, input_dim2), jnp.float32)
    w1b, b1b, w2b, b2b = init_params(k4, input_dim2, hidden_dim2)
    ref2 = jnp.maximum(jnp.maximum(x2 @ w1b + b1b, 0.0) @ w2b + b2b, 0.0)
    p_tiled = prepare_params(w1b, b1b, w2b, b2b, compute_dtype=jnp.float32,
                             hidden_tile=128)         # force the tiled path
    out2 = jax.block_until_ready(diffusion_denoiser(x2, p_tiled))
    assert out2.shape == (batch2, input_dim2)
    assert jnp.allclose(out2, ref2, atol=1e-4, rtol=1e-4)

    print("KERNEL_OK")
</pallas_src>

<mosaic_0001>
module attributes {stable_mosaic.version = 11 : i64} {
  func.func @_resident_kernel(%arg0: i32, %arg1: memref<256x16xf32, #tpu.memory_space<vmem>>, %arg2: memref<16x32xf32, #tpu.memory_space<vmem>>, %arg3: memref<1x32xf32, #tpu.memory_space<vmem>>, %arg4: memref<32x16xf32, #tpu.memory_space<vmem>>, %arg5: memref<1x16xf32, #tpu.memory_space<vmem>>, %arg6: memref<256x16xf32, #tpu.memory_space<vmem>>) attributes {dimension_semantics = [#tpu.dimension_semantics<parallel>], iteration_bounds = array<i64: 2>, scalar_prefetch = 0 : i64, scratch_operands = 0 : i64, tpu.core_type = #tpu.core_type<tc>, window_params = [{transform_indices = @transform_0, window_bounds = array<i64: 256, 16>}, {pipeline_mode = #tpu.pipeline_mode<synchronous>, transform_indices = @transform_1, window_bounds = array<i64: 16, 32>}, {pipeline_mode = #tpu.pipeline_mode<synchronous>, transform_indices = @transform_2, window_bounds = array<i64: 1, 32>}, {pipeline_mode = #tpu.pipeline_mode<synchronous>, transform_indices = @transform_3, window_bounds = array<i64: 32, 16>}, {pipeline_mode = #tpu.pipeline_mode<synchronous>, transform_indices = @transform_4, window_bounds = array<i64: 1, 16>}, {transform_indices = @transform_5, window_bounds = array<i64: 256, 16>}]} {
    %c0 = arith.constant 0 : index
    %c0_0 = arith.constant 0 : index
    %0 = vector.load %arg1[%c0, %c0_0] : memref<256x16xf32, #tpu.memory_space<vmem>>, vector<256x16xf32>
    %c0_1 = arith.constant 0 : index
    %c0_2 = arith.constant 0 : index
    %1 = vector.load %arg2[%c0_1, %c0_2] : memref<16x32xf32, #tpu.memory_space<vmem>>, vector<16x32xf32>
    %cst = arith.constant dense<0.000000e+00> : vector<256x32xf32>
    %2 = tpu.matmul %0, %1, %cst {dimension_numbers = #tpu.dot_dimension_numbers<[1], [0], [0], [1], [0, 0, 1, 1], [], []>} : vector<256x16xf32>, vector<16x32xf32>, vector<256x32xf32> -> vector<256x32xf32>
    %c0_3 = arith.constant 0 : index
    %c0_4 = arith.constant 0 : index
    %3 = vector.load %arg3[%c0_3, %c0_4] : memref<1x32xf32, #tpu.memory_space<vmem>>, vector<1x32xf32>
    %4 = vector.broadcast %3 : vector<1x32xf32> to vector<256x32xf32>
    %5 = arith.addf %2, %4 : vector<256x32xf32>
    %cst_5 = arith.constant 0.000000e+00 : f32
    %6 = vector.broadcast %cst_5 : f32 to vector<256x32xf32>
    %7 = arith.maximumf %5, %6 : vector<256x32xf32>
    %c0_6 = arith.constant 0 : index
    %c0_7 = arith.constant 0 : index
    %8 = vector.load %arg4[%c0_6, %c0_7] : memref<32x16xf32, #tpu.memory_space<vmem>>, vector<32x16xf32>
    %cst_8 = arith.constant dense<0.000000e+00> : vector<256x16xf32>
    %9 = tpu.matmul %7, %8, %cst_8 {dimension_numbers = #tpu.dot_dimension_numbers<[1], [0], [0], [1], [0, 0, 1, 1], [], []>} : vector<256x32xf32>, vector<32x16xf32>, vector<256x16xf32> -> vector<256x16xf32>
    %c0_9 = arith.constant 0 : index
    %c0_10 = arith.constant 0 : index
    %10 = vector.load %arg5[%c0_9, %c0_10] : memref<1x16xf32, #tpu.memory_space<vmem>>, vector<1x16xf32>
    %11 = vector.broadcast %10 : vector<1x16xf32> to vector<256x16xf32>
    %12 = arith.addf %9, %11 : vector<256x16xf32>
    %cst_11 = arith.constant 0.000000e+00 : f32
    %13 = vector.broadcast %cst_11 : f32 to vector<256x16xf32>
    %14 = arith.maximumf %12, %13 : vector<256x16xf32>
    %c0_12 = arith.constant 0 : index
    %c0_13 = arith.constant 0 : index
    %15 = vector.load %arg6[%c0_12, %c0_13] : memref<256x16xf32, #tpu.memory_space<vmem>>, vector<256x16xf32>
    tpu.vector_store %arg6[%c0_12, %c0_13], %14 {strides = array<i32>} : memref<256x16xf32, #tpu.memory_space<vmem>>, vector<256x16xf32>,
    return
  }
  func.func @transform_0(%arg0: i32) -> (i32, i32) {
    %c0_i32 = arith.constant 0 : i32
    %c0_i32_0 = arith.constant 0 : i32
    return %arg0, %c0_i32 : i32, i32
  }
  func.func @transform_1(%arg0: i32) -> (i32, i32) {
    %c0_i32 = arith.constant 0 : i32
    %c0_i32_0 = arith.constant 0 : i32
    %c0_i32_1 = arith.constant 0 : i32
    return %c0_i32, %c0_i32_0 : i32, i32
  }
  func.func @transform_2(%arg0: i32) -> (i32, i32) {
    %c0_i32 = arith.constant 0 : i32
    %c0_i32_0 = arith.constant 0 : i32
    %c0_i32_1 = arith.constant 0 : i32
    return %c0_i32, %c0_i32_0 : i32, i32
  }
  func.func @transform_3(%arg0: i32) -> (i32, i32) {
    %c0_i32 = arith.constant 0 : i32
    %c0_i32_0 = arith.constant 0 : i32
    %c0_i32_1 = arith.constant 0 : i32
    return %c0_i32, %c0_i32_0 : i32, i32
  }
  func.func @transform_4(%arg0: i32) -> (i32, i32) {
    %c0_i32 = arith.constant 0 : i32
    %c0_i32_0 = arith.constant 0 : i32
    %c0_i32_1 = arith.constant 0 : i32
    return %c0_i32, %c0_i32_0 : i32, i32
  }
  func.func @transform_5(%arg0: i32) -> (i32, i32) {
    %c0_i32 = arith.constant 0 : i32
    %c0_i32_0 = arith.constant 0 : i32
    return %arg0, %c0_i32 : i32, i32
  }
}

</mosaic_0001>

<bundles_post_ra>
// kernel: tpu_custom_call.1
= control target key start
LH: loop header
LB: loop body
LE: loop exit
PB: predicated region body
PF: predicated region fallthrough
CT: control target
= control target key end

     0   :  { %s1377_s18 = smov 0   ;;  %s1657_s0 = inlined_call_operand.vmem [shape: f32[512,16], index: 0, kind: input, shape index: {}]   ;;  %s1658_s1 = inlined_call_operand.vmem [shape: f32[16,32], index: 1, kind: input, shape index: {}]   ;;  %s1659_s2 = inlined_call_operand.vmem [shape: f32[1,32], index: 2, kind: input, shape index: {}]   ;;  %s1660_s3 = inlined_call_operand.vmem [shape: f32[32,16], index: 3, kind: input, shape index: {}]   ;;  %s1661_s4 = inlined_call_operand.vmem [shape: f32[1,16], index: 4, kind: input, shape index: {}]   ;;  %s1662_s5 = inlined_call_operand.vmem [shape: f32[512,16], index: 5, kind: output, shape index: {}]  }
   0x1 LB: > { %s1076_s19 = sadd.s32 4294967295, %s1345_s18   ;;  %p1080_p0 = scmp.ge.s32.totalorder %s1345_s18, 1  ;;  %s1345_s18 = sphi %s1377_s18, %s15_s18  }
   0x2   : > { %p188_p1 = scmp.lt.s32.totalorder %s1345_s18, 3 }
   0x4   : > { %p189_p2 = pnand %p1080_p0, %p188_p1 }
   0x5   : > { %s1081_s24 = sshll.u32 (!%p189_p2), %s1076_s19, 5 }
   0x6   : > { %192 = sbr.rel (%p189_p2) target bundleno = 476 (0x1dc), region = 40  ;;  %p217_p3 = scmp.lt.s32.totalorder (!%p189_p2), %s1081_s24, 63 }
   0xb   : > { %v261_v0 = vld [vmem:[%s1658_s1 + $0x8] sm:$0xff]  ;;  %v260_v1 = vld [vmem:[%s1658_s1] sm:$0xff]  ;;  %s1664_s24 = smov (!%p217_p3, %s1081_s24), 63  ;;  %vm269_vm0 = vcmask 130048   ;;  %v626_v34 = vld [vmem:[%s1660_s3 + $0x18] sm:$0xff]  ;;  %vm634_vm1 = vcmask 261120  }
   0xc   : > { %1223 = vmatprep.subr.mxu0 %v261_v0  ;;  %s1082_s25 = sshll.u32 %s1664_s24, 3  ;;  %1275 = vmatprep.subr.mxu1 %v626_v34  ;;  %v625_v35 = vld [vmem:[%s1660_s3 + $0x10] sm:$0xff]  ;;  %v624_v36 = vld [vmem:[%s1660_s3 + $0x8] sm:$0xff]  ;;  %v623_v37 = vld [vmem:[%s1660_s3] sm:$0xff] }
   0xd   : > { %1224 = vmatpush3.msra.mxu0 %v261_v0  ;;  %s1399_s28 = scalar_lea.vmem %s1657_s0, %s1082_s25  ;;  %1276 = vmatpush3.msra.mxu1 %v626_v34  ;;  %v1480_v38 = vld [vmem:[%s1659_s2] ss:$0 sm:$0xff]  ;;  %s1557_s19 = scalar_lea.vmem %s1662_s5, %s1082_s25 }
   0xe   : > { %1225 = vmatprep.subr.mxu0 %v260_v1  ;;  %v228_v2 = vld [vmem:[%s1399_s28] sm:$0xff]  ;;  %v229_v3 = vld [vmem:[%s1399_s28 + $0x8] sm:$0xff]  ;;  %v230_v4 = vld [vmem:[%s1399_s28 + $0x10] sm:$0xff]  ;;  %1277 = vmatprep.subr.mxu1 %v625_v35 }
   0xf   : > { %1226 = vmatpush3.msra.mxu0 %v260_v1  ;;  %1227 = vmatprep.mubr.msk.f32.mxu0 %vm269_vm0, %v228_v2  ;;  %v231_v5 = vld [vmem:[%s1399_s28 + $0x18] sm:$0xff]  ;;  %v232_v6 = vld [vmem:[%s1399_s28 + $0x20] sm:$0xff]  ;;  %v233_v7 = vld [vmem:[%s1399_s28 + $0x28] sm:$0xff] }
  0x10   : > { %1228 = vmatmul.mubr.msk.f32.vlgmr.msra.gmra.mxu0 %vm269_vm0, %v229_v3  ;;  %v234_v8 = vld [vmem:[%s1399_s28 + $0x30] sm:$0xff]  ;;  %v235_v9 = vld [vmem:[%s1399_s28 + $0x38] sm:$0xff]  ;;  %v236_v10 = vld [vmem:[%s1399_s28 + $0x40] sm:$0xff]  ;;  %1278 = vmatpush3.msra.mxu1 %v625_v35 }
  0x11   : > { %1230 = vmatprep.mubr.msk.f32.mxu0 %vm269_vm0, %v230_v4  ;;  %v237_v11 = vld [vmem:[%s1399_s28 + $0x48] sm:$0xff]  ;;  %v238_v12 = vld [vmem:[%s1399_s28 + $0x50] sm:$0xff]  ;;  %v239_v13 = vld [vmem:[%s1399_s28 + $0x58] sm:$0xff]  ;;  %1279 = vmatprep.subr.mxu1 %v624_v36 }
  0x12   : > { %v240_v14 = vld [vmem:[%s1399_s28 + $0x60] sm:$0xff]  ;;  %v241_v15 = vld [vmem:[%s1399_s28 + $0x68] sm:$0xff]  ;;  %v242_v16 = vld [vmem:[%s1399_s28 + $0x70] sm:$0xff]  ;;  %1280 = vmatpush3.msra.mxu1 %v624_v36 }
  0x13   : > { %v243_v17 = vld [vmem:[%s1399_s28 + $0x78] sm:$0xff]  ;;  %v244_v18 = vld [vmem:[%s1399_s28 + $0x80] sm:$0xff]  ;;  %v245_v19 = vld [vmem:[%s1399_s28 + $0x88] sm:$0xff]  ;;  %1281 = vmatprep.subr.mxu1 %v623_v37 }
  0x14   : > { %1231 = vmatmul.mubr.msk.f32.gmra.mxu0 %vm269_vm0, %v231_v5  ;;  %v246_v20 = vld [vmem:[%s1399_s28 + $0x90] sm:$0xff]  ;;  %v247_v21 = vld [vmem:[%s1399_s28 + $0x98] sm:$0xff]  ;;  %v248_v22 = vld [vmem:[%s1399_s28 + $0xa0] sm:$0xff]  ;;  %1282 = vmatpush3.msra.mxu1 %v623_v37 }
  0x15   : > { %1233 = vmatprep.mubr.msk.f32.mxu0 %vm269_vm0, %v232_v6  ;;  %v249_v23 = vld [vmem:[%s1399_s28 + $0xa8] sm:$0xff]  ;;  %v250_v24 = vld [vmem:[%s1399_s28 + $0xb0] sm:$0xff]  ;;  %v251_v25 = vld [vmem:[%s1399_s28 + $0xb8] sm:$0xff] }
  0x16   : > { %v252_v26 = vld [vmem:[%s1399_s28 + $0xc0] sm:$0xff]  ;;  %v253_v27 = vld [vmem:[%s1399_s28 + $0xc8] sm:$0xff]  ;;  %v254_v28 = vld [vmem:[%s1399_s28 + $0xd0] sm:$0xff] }
  0x17   : > { %v255_v29 = vld [vmem:[%s1399_s28 + $0xd8] sm:$0xff]  ;;  %v256_v30 = vld [vmem:[%s1399_s28 + $0xe0] sm:$0xff]  ;;  %v257_v31 = vld [vmem:[%s1399_s28 + $0xe8] sm:$0xff] }
  0x18   : > { %1234 = vmatmul.mubr.msk.f32.gmra.mxu0 %vm269_vm0, %v233_v7  ;;  %v258_v32 = vld [vmem:[%s1399_s28 + $0xf0] sm:$0xff]  ;;  %v259_v33 = vld [vmem:[%s1399_s28 + $0xf8] sm:$0xff] }
  0x19   : > { %1236 = vmatprep.mubr.msk.f32.mxu0 %vm269_vm0, %v234_v8 }
  0x1c   : > { %1237 = vmatmul.mubr.msk.f32.gmra.mxu0 %vm269_vm0, %v235_v9 }
  0x1d   : > { %1239 = vmatprep.mubr.msk.f32.mxu0 %vm269_vm0, %v236_v10 }
  0x20   : > { %1240 = vmatmul.mubr.msk.f32.gmra.mxu0 %vm269_vm0, %v237_v11 }
  0x21   : > { %1242 = vmatprep.mubr.msk.f32.mxu0 %vm269_vm0, %v238_v12 }
  0x24   : > { %1243 = vmatmul.mubr.msk.f32.gmra.mxu0 %vm269_vm0, %v239_v13 }
  0x25   : > { %1245 = vmatprep.mubr.msk.f32.mxu0 %vm269_vm0, %v240_v14 }
  0x28   : > { %1246 = vmatmul.mubr.msk.f32.gmra.mxu0 %vm269_vm0, %v241_v15 }
  0x29   : > { %1248 = vmatprep.mubr.msk.f32.mxu0 %vm269_vm0, %v242_v16 }
  0x2c   : > { %1249 = vmatmul.mubr.msk.f32.gmra.mxu0 %vm269_vm0, %v243_v17 }
  0x2d   : > { %1251 = vmatprep.mubr.msk.f32.mxu0 %vm269_vm0, %v244_v18 }
  0x30   : > { %1252 = vmatmul.mubr.msk.f32.gmra.mxu0 %vm269_vm0, %v245_v19 }
  0x31   : > { %1254 = vmatprep.mubr.msk.f32.mxu0 %vm269_vm0, %v246_v20 }
  0x34   : > { %1255 = vmatmul.mubr.msk.f32.gmra.mxu0 %vm269_vm0, %v247_v21 }
  0x35   : > { %1257 = vmatprep.mubr.msk.f32.mxu0 %vm269_vm0, %v248_v22 }
  0x38   : > { %1258 = vmatmul.mubr.msk.f32.gmra.mxu0 %vm269_vm0, %v249_v23 }
  0x39   : > { %1260 = vmatprep.mubr.msk.f32.mxu0 %vm269_vm0, %v250_v24 }
  0x3c   : > { %1261 = vmatmul.mubr.msk.f32.gmra.mxu0 %vm269_vm0, %v251_v25 }
  0x3d   : > { %1263 = vmatprep.mubr.msk.f32.mxu0 %vm269_vm0, %v252_v26 }
  0x40   : > { %1264 = vmatmul.mubr.msk.f32.gmra.mxu0 %vm269_vm0, %v253_v27 }
  0x41   : > { %1266 = vmatprep.mubr.msk.f32.mxu0 %vm269_vm0, %v254_v28 }
  0x44   : > { %1267 = vmatmul.mubr.msk.f32.gmra.mxu0 %vm269_vm0, %v255_v29 }
  0x45   : > { %1269 = vmatprep.mubr.msk.f32.mxu0 %vm269_vm0, %v256_v30 }
  0x48   : > { %1270 = vmatmul.mubr.msk.f32.gmra.mxu0 %vm269_vm0, %v257_v31 }
  0x49   : > { %1272 = vmatprep.mubr.msk.f32.mxu0 %vm269_vm0, %v258_v32 }
  0x4c   : > { %1273 = vmatmul.mubr.msk.f32.gmra.mxu0 %vm269_vm0, %v259_v33 }
  0xd0   : > { %v1229_v39 = vpop.f32.mrf.mxu0 }
  0xd1   : > { %v438_v40 = vadd.f32 %v1229_v39, %v1480_v38 }
  0xd2   : > { %v432_v41 = vpop.f32.mrf.mxu0 }
  0xd3   : > { %v433_v42 = vadd.f32 %v1480_v38, %v432_v41  ;;  %v592_v45 = vmax.f32 %v438_v40, 0.0 }
  0xd4   : > { %v1232_v43 = vpop.f32.mrf.mxu0 }
  0xd5   : > { %v591_v44 = vmax.f32 %v433_v42, 0.0  ;;  %v448_v46 = vadd.f32 %v1232_v43, %v1480_v38 }
  0xd6   : > { %v442_v47 = vpop.f32.mrf.mxu0 }
  0xd7   : > { %v443_v48 = vadd.f32 %v1480_v38, %v442_v47  ;;  %1283 = vmatprep.mubr.msk.f32.mxu1 %vm634_vm1, %v591_v44  ;;  %v594_v51 = vmax.f32 %v448_v46, 0.0 }
  0xd8   : > { %v1235_v49 = vpop.f32.mrf.mxu0  ;;  %1284 = vmatmul.mubr.msk.f32.vlgmr.msra.gmra.mxu1 %vm634_vm1, %v592_v45 }
  0xd9   : > { %v593_v50 = vmax.f32 %v443_v48, 0.0  ;;  %v458_v52 = vadd.f32 %v1235_v49, %v1480_v38 }
  0xda   : > { %v452_v53 = vpop.f32.mrf.mxu0 }
  0xdb   : > { %v453_v54 = vadd.f32 %v1480_v38, %v452_v53  ;;  %1286 = vmatprep.mubr.msk.f32.mxu1 %vm634_vm1, %v593_v50  ;;  %v596_v57 = vmax.f32 %v458_v52, 0.0 }
  0xdc   : > { %v1238_v55 = vpop.f32.mrf.mxu0  ;;  %1287 = vmatmul.mubr.msk.f32.gmra.mxu1 %vm634_vm1, %v594_v51 }
  0xdd   : > { %v595_v56 = vmax.f32 %v453_v54, 0.0  ;;  %v468_v58 = vadd.f32 %v1238_v55, %v1480_v38 }
  0xde   : > { %v462_v59 = vpop.f32.mrf.mxu0 }
  0xdf   : > { %v463_v60 = vadd.f32 %v1480_v38, %v462_v59  ;;  %1289 = vmatprep.mubr.msk.f32.mxu1 %vm634_vm1, %v595_v56  ;;  %v598_v63 = vmax.f32 %v468_v58, 0.0 }
  0xe0   : > { %v1241_v61 = vpop.f32.mrf.mxu0  ;;  %1290 = vmatmul.mubr.msk.f32.gmra.mxu1 %vm634_vm1, %v596_v57 }
  0xe1   : > { %v597_v62 = vmax.f32 %v463_v60, 0.0  ;;  %v478_v0 = vadd.f32 %v1241_v61, %v1480_v38 }
  0xe2   : > { %v472_v1 = vpop.f32.mrf.mxu0 }
  0xe3   : > { %v473_v2 = vadd.f32 %v1480_v38, %v472_v1  ;;  %1292 = vmatprep.mubr.msk.f32.mxu1 %vm634_vm1, %v597_v62  ;;  %v600_v5 = vmax.f32 %v478_v0, 0.0 }
  0xe4   : > { %v1244_v3 = vpop.f32.mrf.mxu0  ;;  %1293 = vmatmul.mubr.msk.f32.gmra.mxu1 %vm634_vm1, %v598_v63 }
  0xe5   : > { %v599_v4 = vmax.f32 %v473_v2, 0.0  ;;  %v488_v6 = vadd.f32 %v1244_v3, %v1480_v38 }
  0xe6   : > { %v482_v7 = vpop.f32.mrf.mxu0 }
  0xe7   : > { %v483_v8 = vadd.f32 %v1480_v38, %v482_v7  ;;  %1295 = vmatprep.mubr.msk.f32.mxu1 %vm634_vm1, %v599_v4  ;;  %v602_v11 = vmax.f32 %v488_v6, 0.0 }
  0xe8   : > { %v1247_v9 = vpop.f32.mrf.mxu0  ;;  %1296 = vmatmul.mubr.msk.f32.gmra.mxu1 %vm634_vm1, %v600_v5 }
  0xe9   : > { %v601_v10 = vmax.f32 %v483_v8, 0.0  ;;  %v498_v12 = vadd.f32 %v1247_v9, %v1480_v38  ;;  %v1549_v8 = vld [vmem:[%s1661_s4] ss:$0 sm:$0xff] }
  0xea   : > { %v492_v13 = vpop.f32.mrf.mxu0 }
  0xeb   : > { %v493_v14 = vadd.f32 %v1480_v38, %v492_v13  ;;  %1298 = vmatprep.mubr.msk.f32.mxu1 %vm634_vm1, %v601_v10  ;;  %v604_v17 = vmax.f32 %v498_v12, 0.0 }
  0xec   : > { %v1250_v15 = vpop.f32.mrf.mxu0  ;;  %1299 = vmatmul.mubr.msk.f32.gmra.mxu1 %vm634_vm1, %v602_v11 }
  0xed   : > { %v603_v16 = vmax.f32 %v493_v14, 0.0  ;;  %v508_v18 = vadd.f32 %v1250_v15, %v1480_v38 }
  0xee   : > { %v502_v19 = vpop.f32.mrf.mxu0 }
  0xef   : > { %v503_v20 = vadd.f32 %v1480_v38, %v502_v19  ;;  %1301 = vmatprep.mubr.msk.f32.mxu1 %vm634_vm1, %v603_v16  ;;  %v606_v23 = vmax.f32 %v508_v18, 0.0 }
  0xf0   : > { %v1253_v21 = vpop.f32.mrf.mxu0  ;;  %1302 = vmatmul.mubr.msk.f32.gmra.mxu1 %vm634_vm1, %v604_v17 }
  0xf1   : > { %v605_v22 = vmax.f32 %v503_v20, 0.0  ;;  %v518_v24 = vadd.f32 %v1253_v21, %v1480_v38 }
  0xf2   : > { %v512_v25 = vpop.f32.mrf.mxu0 }
  0xf3   : > { %v513_v26 = vadd.f32 %v1480_v38, %v512_v25  ;;  %1304 = vmatprep.mubr.msk.f32.mxu1 %vm634_vm1, %v605_v22  ;;  %v608_v29 = vmax.f32 %v518_v24, 0.0 }
  0xf4   : > { %v1256_v27 = vpop.f32.mrf.mxu0  ;;  %1305 = vmatmul.mubr.msk.f32.gmra.mxu1 %vm634_vm1, %v606_v23 }
  0xf5   : > { %v607_v28 = vmax.f32 %v513_v26, 0.0  ;;  %v528_v30 = vadd.f32 %v1256_v27, %v1480_v38 }
  0xf6   : > { %v522_v31 = vpop.f32.mrf.mxu0 }
  0xf7   : > { %v523_v32 = vadd.f32 %v1480_v38, %v522_v31  ;;  %1307 = vmatprep.mubr.msk.f32.mxu1 %vm634_vm1, %v607_v28  ;;  %v610_v35 = vmax.f32 %v528_v30, 0.0 }
  0xf8   : > { %v1259_v33 = vpop.f32.mrf.mxu0  ;;  %1308 = vmatmul.mubr.msk.f32.gmra.mxu1 %vm634_vm1, %v608_v29 }
  0xf9   : > { %v609_v34 = vmax.f32 %v523_v32, 0.0  ;;  %v538_v36 = vadd.f32 %v1259_v33, %v1480_v38 }
  0xfa   : > { %v532_v37 = vpop.f32.mrf.mxu0 }
  0xfb   : > { %v533_v39 = vadd.f32 %v1480_v38, %v532_v37  ;;  %1310 = vmatprep.mubr.msk.f32.mxu1 %vm634_vm1, %v609_v34  ;;  %v612_v42 = vmax.f32 %v538_v36, 0.0 }
  0xfc   : > { %v1262_v40 = vpop.f32.mrf.mxu0  ;;  %1311 = vmatmul.mubr.msk.f32.gmra.mxu1 %vm634_vm1, %v610_v35 }
  0xfd   : > { %v611_v41 = vmax.f32 %v533_v39, 0.0  ;;  %v548_v43 = vadd.f32 %v1262_v40, %v1480_v38 }
  0xfe   : > { %v542_v44 = vpop.f32.mrf.mxu0 }
  0xff   : > { %v543_v45 = vadd.f32 %v1480_v38, %v542_v44  ;;  %1313 = vmatprep.mubr.msk.f32.mxu1 %vm634_vm1, %v611_v41  ;;  %v614_v48 = vmax.f32 %v548_v43, 0.0 }
 0x100   : > { %v1265_v46 = vpop.f32.mrf.mxu0  ;;  %1314 = vmatmul.mubr.msk.f32.gmra.mxu1 %vm634_vm1, %v612_v42 }
 0x101   : > { %v613_v47 = vmax.f32 %v543_v45, 0.0  ;;  %v558_v49 = vadd.f32 %v1265_v46, %v1480_v38 }
 0x102   : > { %v552_v50 = vpop.f32.mrf.mxu0 }
 0x103   : > { %v553_v51 = vadd.f32 %v1480_v38, %v552_v50  ;;  %1316 = vmatprep.mubr.msk.f32.mxu1 %vm634_vm1, %v613_v47  ;;  %v616_v54 = vmax.f32 %v558_v49, 0.0 }
 0x104   : > { %v1268_v52 = vpop.f32.mrf.mxu0  ;;  %1317 = vmatmul.mubr.msk.f32.gmra.mxu1 %vm634_vm1, %v614_v48 }
 0x105   : > { %v615_v53 = vmax.f32 %v553_v51, 0.0  ;;  %v568_v55 = vadd.f32 %v1268_v52, %v1480_v38 }
 0x106   : > { %v562_v56 = vpop.f32.mrf.mxu0 }
 0x107   : > { %v563_v57 = vadd.f32 %v1480_v38, %v562_v56  ;;  %1319 = vmatprep.mubr.msk.f32.mxu1 %vm634_vm1, %v615_v53  ;;  %v618_v60 = vmax.f32 %v568_v55, 0.0 }
 0x108   : > { %v1271_v58 = vpop.f32.mrf.mxu0  ;;  %1320 = vmatmul.mubr.msk.f32.gmra.mxu1 %vm634_vm1, %v616_v54 }
 0x109   : > { %v617_v59 = vmax.f32 %v563_v57, 0.0  ;;  %v578_v61 = vadd.f32 %v1271_v58, %v1480_v38 }
 0x10a   : > { %v572_v62 = vpop.f32.mrf.mxu0 }
 0x10b   : > { %v573_v63 = vadd.f32 %v1480_v38, %v572_v62  ;;  %1322 = vmatprep.mubr.msk.f32.mxu1 %vm634_vm1, %v617_v59  ;;  %v620_v2 = vmax.f32 %v578_v61, 0.0 }
 0x10c   : > { %v1274_v0 = vpop.f32.mrf.mxu0  ;;  %1323 = vmatmul.mubr.msk.f32.gmra.mxu1 %vm634_vm1, %v618_v60 }
 0x10d   : > { %v619_v1 = vmax.f32 %v573_v63, 0.0  ;;  %v588_v3 = vadd.f32 %v1274_v0, %v1480_v38 }
 0x10e   : > { %v582_v4 = vpop.f32.mrf.mxu0 }
 0x10f   : > { %v583_v5 = vadd.f32 %v1480_v38, %v582_v4  ;;  %1325 = vmatprep.mubr.msk.f32.mxu1 %vm634_vm1, %v619_v1  ;;  %v622_v7 = vmax.f32 %v588_v3, 0.0 }
 0x110   : > { %1326 = vmatmul.mubr.msk.f32.gmra.mxu1 %vm634_vm1, %v620_v2 }
 0x111   : > { %v621_v6 = vmax.f32 %v583_v5, 0.0 }
 0x113   : > { %1328 = vmatprep.mubr.msk.f32.mxu1 %vm634_vm1, %v621_v6 }
 0x114   : > { %1329 = vmatmul.mubr.msk.f32.gmra.mxu1 %vm634_vm1, %v622_v7 }
 0x198   : > { %v1285_v9 = vpop.f32.mrf.mxu1 }
 0x199   : > { %v803_v10 = vadd.f32 %v1285_v9, %v1549_v8 }
 0x19a   : > { %v797_v38 = vpop.f32.mrf.mxu1 }
 0x19b   : > { %v957_v11 = vmax.f32 %v803_v10, 0.0  ;;  %v798_v12 = vadd.f32 %v1549_v8, %v797_v38 }
 0x19c   : > { %v1288_v13 = vpop.f32.mrf.mxu1 }
 0x19d   : > { %989 = vst.msk [vmem:[%s1557_s19 + $0x8] sm:$0xff] %vm269_vm0, %v957_v11  ;;  %v956_v14 = vmax.f32 %v798_v12, 0.0  ;;  %v813_v15 = vadd.f32 %v1288_v13, %v1549_v8 }
 0x19e   : > { %v807_v16 = vpop.f32.mrf.mxu1 }
 0x19f   : > { %988 = vst.msk [vmem:[%s1557_s19] sm:$0xff] %vm269_vm0, %v956_v14  ;;  %v959_v17 = vmax.f32 %v813_v15, 0.0  ;;  %v808_v18 = vadd.f32 %v1549_v8, %v807_v16 }
 0x1a0   : > { %v1291_v19 = vpop.f32.mrf.mxu1 }
 0x1a1   : > { %991 = vst.msk [vmem:[%s1557_s19 + $0x18] sm:$0xff] %vm269_vm0, %v959_v17  ;;  %v958_v20 = vmax.f32 %v808_v18, 0.0  ;;  %v823_v21 = vadd.f32 %v1291_v19, %v1549_v8 }
 0x1a2   : > { %v817_v22 = vpop.f32.mrf.mxu1 }
 0x1a3   : > { %990 = vst.msk [vmem:[%s1557_s19 + $0x10] sm:$0xff] %vm269_vm0, %v958_v20  ;;  %v961_v23 = vmax.f32 %v823_v21, 0.0  ;;  %v818_v24 = vadd.f32 %v1549_v8, %v817_v22 }
 0x1a4   : > { %v1294_v25 = vpop.f32.mrf.mxu1 }
 0x1a5   : > { %993 = vst.msk [vmem:[%s1557_s19 + $0x28] sm:$0xff] %vm269_vm0, %v961_v23  ;;  %v960_v26 = vmax.f32 %v818_v24, 0.0  ;;  %v833_v27 = vadd.f32 %v1294_v25, %v1549_v8 }
 0x1a6   : > { %v827_v28 = vpop.f32.mrf.mxu1 }
 0x1a7   : > { %992 = vst.msk [vmem:[%s1557_s19 + $0x20] sm:$0xff] %vm269_vm0, %v960_v26  ;;  %v963_v29 = vmax.f32 %v833_v27, 0.0  ;;  %v828_v30 = vadd.f32 %v1549_v8, %v827_v28 }
 0x1a8   : > { %v1297_v31 = vpop.f32.mrf.mxu1 }
 0x1a9   : > { %995 = vst.msk [vmem:[%s1557_s19 + $0x38] sm:$0xff] %vm269_vm0, %v963_v29  ;;  %v962_v32 = vmax.f32 %v828_v30, 0.0  ;;  %v843_v33 = vadd.f32 %v1297_v31, %v1549_v8 }
 0x1aa   : > { %v837_v34 = vpop.f32.mrf.mxu1 }
 0x1ab   : > { %994 = vst.msk [vmem:[%s1557_s19 + $0x30] sm:$0xff] %vm269_vm0, %v962_v32  ;;  %v965_v35 = vmax.f32 %v843_v33, 0.0  ;;  %v838_v36 = vadd.f32 %v1549_v8, %v837_v34 }
 0x1ac   : > { %v1300_v37 = vpop.f32.mrf.mxu1 }
 0x1ad   : > { %997 = vst.msk [vmem:[%s1557_s19 + $0x48] sm:$0xff] %vm269_vm0, %v965_v35  ;;  %v964_v39 = vmax.f32 %v838_v36, 0.0  ;;  %v853_v40 = vadd.f32 %v1300_v37, %v1549_v8 }
 0x1ae   : > { %v847_v41 = vpop.f32.mrf.mxu1 }
 0x1af   : > { %996 = vst.msk [vmem:[%s1557_s19 + $0x40] sm:$0xff] %vm269_vm0, %v964_v39  ;;  %v967_v42 = vmax.f32 %v853_v40, 0.0  ;;  %v848_v43 = vadd.f32 %v1549_v8, %v847_v41 }
 0x1b0   : > { %v1303_v44 = vpop.f32.mrf.mxu1 }
 0x1b1   : > { %999 = vst.msk [vmem:[%s1557_s19 + $0x58] sm:$0xff] %vm269_vm0, %v967_v42  ;;  %v966_v45 = vmax.f32 %v848_v43, 0.0  ;;  %v863_v46 = vadd.f32 %v1303_v44, %v1549_v8 }
 0x1b2   : > { %v857_v47 = vpop.f32.mrf.mxu1 }
 0x1b3   : > { %998 = vst.msk [vmem:[%s1557_s19 + $0x50] sm:$0xff] %vm269_vm0, %v966_v45  ;;  %v969_v48 = vmax.f32 %v863_v46, 0.0  ;;  %v858_v49 = vadd.f32 %v1549_v8, %v857_v47 }
 0x1b4   : > { %v1306_v50 = vpop.f32.mrf.mxu1 }
 0x1b5   : > { %1001 = vst.msk [vmem:[%s1557_s19 + $0x68] sm:$0xff] %vm269_vm0, %v969_v48  ;;  %v968_v51 = vmax.f32 %v858_v49, 0.0  ;;  %v873_v52 = vadd.f32 %v1306_v50, %v1549_v8 }
 0x1b6   : > { %v867_v53 = vpop.f32.mrf.mxu1 }
 0x1b7   : > { %1000 = vst.msk [vmem:[%s1557_s19 + $0x60] sm:$0xff] %vm269_vm0, %v968_v51  ;;  %v971_v54 = vmax.f32 %v873_v52, 0.0  ;;  %v868_v55 = vadd.f32 %v1549_v8, %v867_v53 }
 0x1b8   : > { %v1309_v56 = vpop.f32.mrf.mxu1 }
 0x1b9   : > { %1003 = vst.msk [vmem:[%s1557_s19 + $0x78] sm:$0xff] %vm269_vm0, %v971_v54  ;;  %v970_v57 = vmax.f32 %v868_v55, 0.0  ;;  %v883_v58 = vadd.f32 %v1309_v56, %v1549_v8 }
 0x1ba   : > { %v877_v59 = vpop.f32.mrf.mxu1 }
 0x1bb   : > { %1002 = vst.msk [vmem:[%s1557_s19 + $0x70] sm:$0xff] %vm269_vm0, %v970_v57  ;;  %v973_v60 = vmax.f32 %v883_v58, 0.0  ;;  %v878_v61 = vadd.f32 %v1549_v8, %v877_v59 }
 0x1bc   : > { %v1312_v62 = vpop.f32.mrf.mxu1 }
 0x1bd   : > { %1005 = vst.msk [vmem:[%s1557_s19 + $0x88] sm:$0xff] %vm269_vm0, %v973_v60  ;;  %v972_v63 = vmax.f32 %v878_v61, 0.0  ;;  %v893_v0 = vadd.f32 %v1312_v62, %v1549_v8 }
 0x1be   : > { %v887_v1 = vpop.f32.mrf.mxu1 }
 0x1bf   : > { %1004 = vst.msk [vmem:[%s1557_s19 + $0x80] sm:$0xff] %vm269_vm0, %v972_v63  ;;  %v975_v2 = vmax.f32 %v893_v0, 0.0  ;;  %v888_v3 = vadd.f32 %v1549_v8, %v887_v1 }
 0x1c0   : > { %v1315_v4 = vpop.f32.mrf.mxu1 }
 0x1c1   : > { %1007 = vst.msk [vmem:[%s1557_s19 + $0x98] sm:$0xff] %vm269_vm0, %v975_v2  ;;  %v974_v5 = vmax.f32 %v888_v3, 0.0  ;;  %v903_v6 = vadd.f32 %v1315_v4, %v1549_v8 }
 0x1c2   : > { %v897_v7 = vpop.f32.mrf.mxu1 }
 0x1c3   : > { %1006 = vst.msk [vmem:[%s1557_s19 + $0x90] sm:$0xff] %vm269_vm0, %v974_v5  ;;  %v977_v9 = vmax.f32 %v903_v6, 0.0  ;;  %v898_v10 = vadd.f32 %v1549_v8, %v897_v7 }
 0x1c4   : > { %v1318_v38 = vpop.f32.mrf.mxu1 }
 0x1c5   : > { %1009 = vst.msk [vmem:[%s1557_s19 + $0xa8] sm:$0xff] %vm269_vm0, %v977_v9  ;;  %v976_v11 = vmax.f32 %v898_v10, 0.0  ;;  %v913_v12 = vadd.f32 %v1318_v38, %v1549_v8 }
 0x1c6   : > { %v907_v13 = vpop.f32.mrf.mxu1 }
 0x1c7   : > { %1008 = vst.msk [vmem:[%s1557_s19 + $0xa0] sm:$0xff] %vm269_vm0, %v976_v11  ;;  %v979_v14 = vmax.f32 %v913_v12, 0.0  ;;  %v908_v15 = vadd.f32 %v1549_v8, %v907_v13 }
 0x1c8   : > { %v1321_v16 = vpop.f32.mrf.mxu1 }
 0x1c9   : > { %1011 = vst.msk [vmem:[%s1557_s19 + $0xb8] sm:$0xff] %vm269_vm0, %v979_v14  ;;  %v978_v17 = vmax.f32 %v908_v15, 0.0  ;;  %v923_v18 = vadd.f32 %v1321_v16, %v1549_v8 }
 0x1ca   : > { %v917_v19 = vpop.f32.mrf.mxu1 }
 0x1cb   : > { %1010 = vst.msk [vmem:[%s1557_s19 + $0xb0] sm:$0xff] %vm269_vm0, %v978_v17  ;;  %v981_v20 = vmax.f32 %v923_v18, 0.0  ;;  %v918_v21 = vadd.f32 %v1549_v8, %v917_v19 }
 0x1cc   : > { %v1324_v22 = vpop.f32.mrf.mxu1 }
 0x1cd   : > { %1013 = vst.msk [vmem:[%s1557_s19 + $0xc8] sm:$0xff] %vm269_vm0, %v981_v20  ;;  %v980_v23 = vmax.f32 %v918_v21, 0.0  ;;  %v933_v24 = vadd.f32 %v1324_v22, %v1549_v8 }
 0x1ce   : > { %v927_v25 = vpop.f32.mrf.mxu1 }
 0x1cf   : > { %1012 = vst.msk [vmem:[%s1557_s19 + $0xc0] sm:$0xff] %vm269_vm0, %v980_v23  ;;  %v983_v26 = vmax.f32 %v933_v24, 0.0  ;;  %v928_v27 = vadd.f32 %v1549_v8, %v927_v25 }
 0x1d0   : > { %v1327_v28 = vpop.f32.mrf.mxu1 }
 0x1d1   : > { %1015 = vst.msk [vmem:[%s1557_s19 + $0xd8] sm:$0xff] %vm269_vm0, %v983_v26  ;;  %v982_v29 = vmax.f32 %v928_v27, 0.0  ;;  %v943_v30 = vadd.f32 %v1327_v28, %v1549_v8 }
 0x1d2   : > { %v937_v31 = vpop.f32.mrf.mxu1 }
 0x1d3   : > { %1014 = vst.msk [vmem:[%s1557_s19 + $0xd0] sm:$0xff] %vm269_vm0, %v982_v29  ;;  %v985_v32 = vmax.f32 %v943_v30, 0.0  ;;  %v938_v33 = vadd.f32 %v1549_v8, %v937_v31 }
 0x1d4   : > { %v1330_v34 = vpop.f32.mrf.mxu1 }
 0x1d5   : > { %1017 = vst.msk [vmem:[%s1557_s19 + $0xe8] sm:$0xff] %vm269_vm0, %v985_v32  ;;  %v984_v35 = vmax.f32 %v938_v33, 0.0  ;;  %v953_v36 = vadd.f32 %v1330_v34, %v1549_v8 }
 0x1d6   : > { %v947_v37 = vpop.f32.mrf.mxu1 }
 0x1d7   : > { %1016 = vst.msk [vmem:[%s1557_s19 + $0xe0] sm:$0xff] %vm269_vm0, %v984_v35  ;;  %v987_v39 = vmax.f32 %v953_v36, 0.0  ;;  %v948_v40 = vadd.f32 %v1549_v8, %v947_v37 }
 0x1d9   : > { %1019 = vst.msk [vmem:[%s1557_s19 + $0xf8] sm:$0xff] %vm269_vm0, %v987_v39  ;;  %v986_v41 = vmax.f32 %v948_v40, 0.0 }
 0x1db   : > { %1018 = vst.msk [vmem:[%s1557_s19 + $0xf0] sm:$0xff] %vm269_vm0, %v986_v41 }
 0x1dc PF: > { %s15_s18 = sadd.s32 1, %s1345_s18  }
 0x1dd   : > { %p12_p4 = scmp.ge.s32.totalorder %s15_s18, 4  }
 0x1df   :  { %14 = sbr.rel (!%p12_p4) target bundleno = 1 (0x1), region = 70 }

</bundles_post_ra>
